<compile_context>
chip_gen: v7x
topology: tpu7x:2x2x1
jax: 0.10.0
libtpu: 0.0.40
codegen_flags: <defaults>
</compile_context>

<pallas_src>
import functools

import jax
import jax.numpy as jnp
import numpy as np
from jax.experimental import pallas as pl
from jax.experimental.pallas import tpu as pltpu

LANE = 128
SUBLANE = 8
_VMEM_LIMIT = 32 * 1024 * 1024  # explicit scoped-VMEM budget, safe on v5e/v6e/v7x


def _round_up(x, m):
    return (x + m - 1) // m * m


def _pad2(x, shape, dtype):
    pads = [(0, t - s) for s, t in zip(x.shape, shape)]
    return jnp.pad(x, pads).astype(dtype)


# ----------------------------------------------------------------------------
# Fused GCN layer:  out = maybe_relu( (A_hat @ feat) @ W + b )
#   grid = (row_tiles [parallel], col_tiles [arbitrary reduction])
# ----------------------------------------------------------------------------
def _gcn_layer_kernel(adj_ref, feat_ref, w_ref, b_ref, out_ref, acc_ref, *,
                      apply_relu):
    k = pl.program_id(1)

    @pl.when(k == 0)
    def _init():
        acc_ref[...] = jnp.zeros_like(acc_ref)

    # Pure-MXU inner loop: accumulate the N^2 propagation in f32.
    acc_ref[...] += jnp.dot(adj_ref[...], feat_ref[...],
                            preferred_element_type=jnp.float32)

    @pl.when(k == pl.num_programs(1) - 1)
    def _finalize():
        # Weight transform + bias (+ ReLU) once per row tile, in the epilogue.
        h = jnp.dot(acc_ref[...].astype(jnp.bfloat16), w_ref[...],
                    preferred_element_type=jnp.float32) + b_ref[...]
        if apply_relu:
            h = jnp.maximum(h, 0.0)
        out_ref[...] = h.astype(out_ref.dtype)


def _gcn_layer(adj, feat, w, b, *, apply_relu, tile_n):
    n_pad = adj.shape[0]
    f_in = feat.shape[1]
    f_out = w.shape[1]
    grid = (n_pad // tile_n, n_pad // tile_n)
    kernel = functools.partial(_gcn_layer_kernel, apply_relu=apply_relu)
    return pl.pallas_call(
        kernel,
        out_shape=jax.ShapeDtypeStruct((n_pad, f_out), jnp.bfloat16),
        grid_spec=pltpu.PrefetchScalarGridSpec(
            num_scalar_prefetch=0,
            grid=grid,
            in_specs=[
                pl.BlockSpec((tile_n, tile_n), lambda i, k: (i, k)),   # A_hat
                pl.BlockSpec((tile_n, f_in), lambda i, k: (k, 0)),     # feat
                pl.BlockSpec((f_in, f_out), lambda i, k: (0, 0)),      # W
                pl.BlockSpec((1, f_out), lambda i, k: (0, 0)),         # bias
            ],
            out_specs=pl.BlockSpec((tile_n, f_out), lambda i, k: (i, 0)),
            scratch_shapes=[pltpu.VMEM((tile_n, f_in), jnp.float32)],
        ),
        compiler_params=pltpu.CompilerParams(
            dimension_semantics=("parallel", "arbitrary"),
            vmem_limit_bytes=_VMEM_LIMIT,
        ),
    )(adj, feat, w, b)


# ----------------------------------------------------------------------------
# global_mean_pool:  pooled = P @ h2   (reduction over node tiles)
# ----------------------------------------------------------------------------
def _pool_kernel(pool_ref, feat_ref, out_ref):
    k = pl.program_id(0)

    @pl.when(k == 0)
    def _init():
        out_ref[...] = jnp.zeros_like(out_ref)

    out_ref[...] += jnp.dot(pool_ref[...], feat_ref[...].astype(jnp.float32),
                            preferred_element_type=jnp.float32)


def _global_mean_pool(pool_mat, feat, *, tile_n):
    g_pad, n_pad = pool_mat.shape
    f = feat.shape[1]
    return pl.pallas_call(
        _pool_kernel,
        out_shape=jax.ShapeDtypeStruct((g_pad, f), jnp.float32),
        grid_spec=pltpu.PrefetchScalarGridSpec(
            num_scalar_prefetch=0,
            grid=(n_pad // tile_n,),
            in_specs=[
                pl.BlockSpec((g_pad, tile_n), lambda k: (0, k)),
                pl.BlockSpec((tile_n, f), lambda k: (k, 0)),
            ],
            out_specs=pl.BlockSpec((g_pad, f), lambda k: (0, 0)),
        ),
        compiler_params=pltpu.CompilerParams(
            dimension_semantics=("arbitrary",),
            vmem_limit_bytes=_VMEM_LIMIT,
        ),
    )(pool_mat, feat)


# ----------------------------------------------------------------------------
# Full forward (eval mode)
# ----------------------------------------------------------------------------
def graph_classifier_forward(adj_hat, x, w1, b1, w2, b2, pool_mat, wlin, blin):
    n_nodes, c_in = x.shape
    hidden = w1.shape[1]
    n_graphs = pool_mat.shape[0]

    n_pad = _round_up(n_nodes, LANE)
    tile_n = next(t for t in (512, 256, 128) if n_pad % t == 0)
    c_pad = _round_up(c_in, LANE)
    h_pad = _round_up(hidden, LANE)
    g_pad = _round_up(n_graphs, SUBLANE)

    # Lane/sublane-padded, bf16 MXU feeds (zero padding is exact for the math).
    adj_p = _pad2(adj_hat, (n_pad, n_pad), jnp.bfloat16)
    x_p = _pad2(x, (n_pad, c_pad), jnp.bfloat16)
    w1_p = _pad2(w1, (c_pad, h_pad), jnp.bfloat16)
    b1_p = _pad2(b1.reshape(1, -1), (1, h_pad), jnp.float32)
    w2_p = _pad2(w2, (h_pad, h_pad), jnp.bfloat16)
    b2_p = _pad2(b2.reshape(1, -1), (1, h_pad), jnp.float32)
    pool_p = _pad2(pool_mat, (g_pad, n_pad), jnp.float32)

    # conv1 + ReLU   (dropout p=0.5 is identity in eval mode)
    h1 = _gcn_layer(adj_p, x_p, w1_p, b1_p, apply_relu=True, tile_n=tile_n)
    # conv2
    h2 = _gcn_layer(adj_p, h1, w2_p, b2_p, apply_relu=False, tile_n=tile_n)
    # global mean pool  (dropout identity)
    pooled = _global_mean_pool(pool_p, h2, tile_n=tile_n)        # (g_pad, h_pad)

    # Tiny width-1 final linear stays outside the kernel (lane-dense outputs).
    pooled = pooled[:n_graphs, :hidden]
    return pooled @ wlin + blin.reshape(1, -1)


# ----------------------------------------------------------------------------
# Plain-JAX glue: normalized adjacency and mean-pool matrix
# ----------------------------------------------------------------------------
def build_normalized_adjacency(edge_index, num_nodes):
    """A_hat = D^{-1/2} (A + I) D^{-1/2}, GCNConv default normalization."""
    src, dst = edge_index[0], edge_index[1]
    adj = jnp.zeros((num_nodes, num_nodes), jnp.float32)
    adj = adj.at[dst, src].set(1.0)                      # message j -> i
    adj = adj + jnp.eye(num_nodes, dtype=jnp.float32)    # self loops
    deg = jnp.sum(adj, axis=1)
    dinv = jnp.where(deg > 0, 1.0 / jnp.sqrt(deg), 0.0)
    return dinv[:, None] * adj * dinv[None, :]


def build_pool_matrix(batch, num_graphs):
    onehot = (batch[None, :] == jnp.arange(num_graphs)[:, None]).astype(jnp.float32)
    counts = jnp.sum(onehot, axis=1, keepdims=True)
    return onehot / jnp.maximum(counts, 1.0)             # (G, N)


if __name__ == "__main__":
    # Small deterministic problem: 2 graphs x 8 nodes, in=4, hidden=32.
    num_nodes = 16
    in_channels = 4
    hidden_channels = 32
    num_graphs = 2

    key = jax.random.PRNGKey(0)
    k_x, k_w1, k_w2, k_wl = jax.random.split(key, 4)

    x = jax.random.normal(k_x, (num_nodes, in_channels), jnp.float32)

    # Undirected ring within each graph of 8 nodes
    edges = []
    for g in range(num_graphs):
        base = g * 8
        for i in range(8):
            a, b = base + i, base + (i + 1) % 8
            edges.append((a, b))
            edges.append((b, a))
    edge_index = jnp.array(np.array(edges, dtype=np.int32).T)   # (2, E)

    batch = jnp.array(np.repeat(np.arange(num_graphs), 8).astype(np.int32))

    w1 = jax.random.normal(k_w1, (in_channels, hidden_channels), jnp.float32) * 0.3
    b1 = jnp.zeros((1, hidden_channels), jnp.float32)
    w2 = jax.random.normal(k_w2, (hidden_channels, hidden_channels), jnp.float32) * 0.15
    b2 = jnp.zeros((1, hidden_channels), jnp.float32)
    wlin = jax.random.normal(k_wl, (hidden_channels, 1), jnp.float32) * 0.15
    blin = jnp.zeros((1, 1), jnp.float32)

    adj_hat = build_normalized_adjacency(edge_index, num_nodes)
    pool_mat = build_pool_matrix(batch, num_graphs)

    fwd = jax.jit(graph_classifier_forward)
    out = fwd(adj_hat, x, w1, b1, w2, b2, pool_mat, wlin, blin)
    out = jax.block_until_ready(out)

    # Pure-f32 JAX reference (kernel uses bf16 MXU feeds -> loose tolerance).
    h1 = jnp.maximum(adj_hat @ (x @ w1) + b1, 0.0)
    h2 = adj_hat @ (h1 @ w2) + b2
    ref = (pool_mat @ h2) @ wlin + blin
    np.testing.assert_allclose(np.asarray(out), np.asarray(ref), rtol=5e-2, atol=5e-2)

    assert out.shape == (num_graphs, 1)
    print("KERNEL_OK")
</pallas_src>

<mosaic_0001>
module attributes {stable_mosaic.version = 11 : i64} {
  func.func @_gcn_layer_kernel(%arg0: i32, %arg1: i32, %arg2: memref<128x128xbf16, #tpu.memory_space<vmem>>, %arg3: memref<128x128xbf16, #tpu.memory_space<vmem>>, %arg4: memref<128x128xbf16, #tpu.memory_space<vmem>>, %arg5: memref<1x128xf32, #tpu.memory_space<vmem>>, %arg6: memref<128x128xbf16, #tpu.memory_space<vmem>>, %arg7: memref<128x128xf32, #tpu.memory_space<vmem>>) attributes {dimension_semantics = [#tpu.dimension_semantics<parallel>, #tpu.dimension_semantics<arbitrary>], iteration_bounds = array<i64: 1, 1>, scalar_prefetch = 0 : i64, scratch_operands = 1 : i64, tpu.core_type = #tpu.core_type<tc>, window_params = [{transform_indices = @transform_0, window_bounds = array<i64: 128, 128>}, {transform_indices = @transform_1, window_bounds = array<i64: 128, 128>}, {pipeline_mode = #tpu.pipeline_mode<synchronous>, transform_indices = @transform_2, window_bounds = array<i64: 128, 128>}, {pipeline_mode = #tpu.pipeline_mode<synchronous>, transform_indices = @transform_3, window_bounds = array<i64: 1, 128>}, {transform_indices = @transform_4, window_bounds = array<i64: 128, 128>}]} {
    %c0_i32 = arith.constant 0 : i32
    %0 = arith.cmpi eq, %arg1, %c0_i32 : i32
    %1 = arith.extui %0 : i1 to i32
    %c0_i32_0 = arith.constant 0 : i32
    %2 = arith.cmpi ne, %1, %c0_i32_0 : i32
    scf.if %2 {
      %cst_10 = arith.constant 0.000000e+00 : f32
      %12 = vector.broadcast %cst_10 : f32 to vector<128x128xf32>
      %c0_11 = arith.constant 0 : index
      %c0_12 = arith.constant 0 : index
      %13 = vector.load %arg7[%c0_11, %c0_12] : memref<128x128xf32, #tpu.memory_space<vmem>>, vector<128x128xf32>
      tpu.vector_store %arg7[%c0_11, %c0_12], %12 {strides = array<i32>} : memref<128x128xf32, #tpu.memory_space<vmem>>, vector<128x128xf32>,
    } else {
    }
    %c0 = arith.constant 0 : index
    %c0_1 = arith.constant 0 : index
    %3 = vector.load %arg7[%c0, %c0_1] : memref<128x128xf32, #tpu.memory_space<vmem>>, vector<128x128xf32>
    %c0_2 = arith.constant 0 : index
    %c0_3 = arith.constant 0 : index
    %4 = vector.load %arg2[%c0_2, %c0_3] : memref<128x128xbf16, #tpu.memory_space<vmem>>, vector<128x128xbf16>
    %c0_4 = arith.constant 0 : index
    %c0_5 = arith.constant 0 : index
    %5 = vector.load %arg3[%c0_4, %c0_5] : memref<128x128xbf16, #tpu.memory_space<vmem>>, vector<128x128xbf16>
    %cst = arith.constant dense<0.000000e+00> : vector<128x128xf32>
    %6 = tpu.matmul %4, %5, %cst {dimension_numbers = #tpu.dot_dimension_numbers<[1], [0], [0], [1], [0, 0, 1, 1], [], []>} : vector<128x128xbf16>, vector<128x128xbf16>, vector<128x128xf32> -> vector<128x128xf32>
    %7 = arith.addf %3, %6 : vector<128x128xf32>
    %c0_6 = arith.constant 0 : index
    %c0_7 = arith.constant 0 : index
    %8 = vector.load %arg7[%c0_6, %c0_7] : memref<128x128xf32, #tpu.memory_space<vmem>>, vector<128x128xf32>
    tpu.vector_store %arg7[%c0_6, %c0_7], %7 {strides = array<i32>} : memref<128x128xf32, #tpu.memory_space<vmem>>, vector<128x128xf32>,
    %c0_i32_8 = arith.constant 0 : i32
    %9 = arith.cmpi eq, %arg1, %c0_i32_8 : i32
    %10 = arith.extui %9 : i1 to i32
    %c0_i32_9 = arith.constant 0 : i32
    %11 = arith.cmpi ne, %10, %c0_i32_9 : i32
    scf.if %11 {
      %c0_10 = arith.constant 0 : index
      %c0_11 = arith.constant 0 : index
      %12 = vector.load %arg7[%c0_10, %c0_11] : memref<128x128xf32, #tpu.memory_space<vmem>>, vector<128x128xf32>
      %13 = arith.truncf %12 : vector<128x128xf32> to vector<128x128xbf16>
      %c0_12 = arith.constant 0 : index
      %c0_13 = arith.constant 0 : index
      %14 = vector.load %arg4[%c0_12, %c0_13] : memref<128x128xbf16, #tpu.memory_space<vmem>>, vector<128x128xbf16>
      %cst_14 = arith.constant dense<0.000000e+00> : vector<128x128xf32>
      %15 = tpu.matmul %13, %14, %cst_14 {dimension_numbers = #tpu.dot_dimension_numbers<[1], [0], [0], [1], [0, 0, 1, 1], [], []>} : vector<128x128xbf16>, vector<128x128xbf16>, vector<128x128xf32> -> vector<128x128xf32>
      %c0_15 = arith.constant 0 : index
      %c0_16 = arith.constant 0 : index
      %16 = vector.load %arg5[%c0_15, %c0_16] : memref<1x128xf32, #tpu.memory_space<vmem>>, vector<1x128xf32>
      %17 = vector.broadcast %16 : vector<1x128xf32> to vector<128x128xf32>
      %18 = arith.addf %15, %17 : vector<128x128xf32>
      %cst_17 = arith.constant 0.000000e+00 : f32
      %19 = vector.broadcast %cst_17 : f32 to vector<128x128xf32>
      %20 = arith.maximumf %18, %19 : vector<128x128xf32>
      %21 = arith.truncf %20 : vector<128x128xf32> to vector<128x128xbf16>
      %c0_18 = arith.constant 0 : index
      %c0_19 = arith.constant 0 : index
      %22 = vector.load %arg6[%c0_18, %c0_19] : memref<128x128xbf16, #tpu.memory_space<vmem>>, vector<128x128xbf16>
      tpu.vector_store %arg6[%c0_18, %c0_19], %21 {strides = array<i32>} : memref<128x128xbf16, #tpu.memory_space<vmem>>, vector<128x128xbf16>,
    } else {
    }
    return
  }
  func.func @transform_0(%arg0: i32, %arg1: i32) -> (i32, i32) {
    %c0_i32 = arith.constant 0 : i32
    return %arg0, %arg1 : i32, i32
  }
  func.func @transform_1(%arg0: i32, %arg1: i32) -> (i32, i32) {
    %c0_i32 = arith.constant 0 : i32
    %c0_i32_0 = arith.constant 0 : i32
    return %arg1, %c0_i32 : i32, i32
  }
  func.func @transform_2(%arg0: i32, %arg1: i32) -> (i32, i32) {
    %c0_i32 = arith.constant 0 : i32
    %c0_i32_0 = arith.constant 0 : i32
    %c0_i32_1 = arith.constant 0 : i32
    return %c0_i32, %c0_i32_0 : i32, i32
  }
  func.func @transform_3(%arg0: i32, %arg1: i32) -> (i32, i32) {
    %c0_i32 = arith.constant 0 : i32
    %c0_i32_0 = arith.constant 0 : i32
    %c0_i32_1 = arith.constant 0 : i32
    return %c0_i32, %c0_i32_0 : i32, i32
  }
  func.func @transform_4(%arg0: i32, %arg1: i32) -> (i32, i32) {
    %c0_i32 = arith.constant 0 : i32
    %c0_i32_0 = arith.constant 0 : i32
    return %arg0, %c0_i32 : i32, i32
  }
}

module attributes {stable_mosaic.version = 11 : i64} {
  func.func @_gcn_layer_kernel(%arg0: i32, %arg1: i32, %arg2: memref<128x128xbf16, #tpu.memory_space<vmem>>, %arg3: memref<128x128xbf16, #tpu.memory_space<vmem>>, %arg4: memref<128x128xbf16, #tpu.memory_space<vmem>>, %arg5: memref<1x128xf32, #tpu.memory_space<vmem>>, %arg6: memref<128x128xbf16, #tpu.memory_space<vmem>>, %arg7: memref<128x128xf32, #tpu.memory_space<vmem>>) attributes {dimension_semantics = [#tpu.dimension_semantics<parallel>, #tpu.dimension_semantics<arbitrary>], iteration_bounds = array<i64: 1, 1>, scalar_prefetch = 0 : i64, scratch_operands = 1 : i64, tpu.core_type = #tpu.core_type<tc>, window_params = [{transform_indices = @transform_0, window_bounds = array<i64: 128, 128>}, {transform_indices = @transform_1, window_bounds = array<i64: 128, 128>}, {pipeline_mode = #tpu.pipeline_mode<synchronous>, transform_indices = @transform_2, window_bounds = array<i64: 128, 128>}, {pipeline_mode = #tpu.pipeline_mode<synchronous>, transform_indices = @transform_3, window_bounds = array<i64: 1, 128>}, {transform_indices = @transform_4, window_bounds = array<i64: 128, 128>}]} {
    %c0_i32 = arith.constant 0 : i32
    %0 = arith.cmpi eq, %arg1, %c0_i32 : i32
    %1 = arith.extui %0 : i1 to i32
    %c0_i32_0 = arith.constant 0 : i32
    %2 = arith.cmpi ne, %1, %c0_i32_0 : i32
    scf.if %2 {
      %cst_10 = arith.constant 0.000000e+00 : f32
      %12 = vector.broadcast %cst_10 : f32 to vector<128x128xf32>
      %c0_11 = arith.constant 0 : index
      %c0_12 = arith.constant 0 : index
      %13 = vector.load %arg7[%c0_11, %c0_12] : memref<128x128xf32, #tpu.memory_space<vmem>>, vector<128x128xf32>
      tpu.vector_store %arg7[%c0_11, %c0_12], %12 {strides = array<i32>} : memref<128x128xf32, #tpu.memory_space<vmem>>, vector<128x128xf32>,
    } else {
    }
    %c0 = arith.constant 0 : index
    %c0_1 = arith.constant 0 : index
    %3 = vector.load %arg7[%c0, %c0_1] : memref<128x128xf32, #tpu.memory_space<vmem>>, vector<128x128xf32>
    %c0_2 = arith.constant 0 : index
    %c0_3 = arith.constant 0 : index
    %4 = vector.load %arg2[%c0_2, %c0_3] : memref<128x128xbf16, #tpu.memory_space<vmem>>, vector<128x128xbf16>
    %c0_4 = arith.constant 0 : index
    %c0_5 = arith.constant 0 : index
    %5 = vector.load %arg3[%c0_4, %c0_5] : memref<128x128xbf16, #tpu.memory_space<vmem>>, vector<128x128xbf16>
    %cst = arith.constant dense<0.000000e+00> : vector<128x128xf32>
    %6 = tpu.matmul %4, %5, %cst {dimension_numbers = #tpu.dot_dimension_numbers<[1], [0], [0], [1], [0, 0, 1, 1], [], []>} : vector<128x128xbf16>, vector<128x128xbf16>, vector<128x128xf32> -> vector<128x128xf32>
    %7 = arith.addf %3, %6 : vector<128x128xf32>
    %c0_6 = arith.constant 0 : index
    %c0_7 = arith.constant 0 : index
    %8 = vector.load %arg7[%c0_6, %c0_7] : memref<128x128xf32, #tpu.memory_space<vmem>>, vector<128x128xf32>
    tpu.vector_store %arg7[%c0_6, %c0_7], %7 {strides = array<i32>} : memref<128x128xf32, #tpu.memory_space<vmem>>, vector<128x128xf32>,
    %c0_i32_8 = arith.constant 0 : i32
    %9 = arith.cmpi eq, %arg1, %c0_i32_8 : i32
    %10 = arith.extui %9 : i1 to i32
    %c0_i32_9 = arith.constant 0 : i32
    %11 = arith.cmpi ne, %10, %c0_i32_9 : i32
    scf.if %11 {
      %c0_10 = arith.constant 0 : index
      %c0_11 = arith.constant 0 : index
      %12 = vector.load %arg7[%c0_10, %c0_11] : memref<128x128xf32, #tpu.memory_space<vmem>>, vector<128x128xf32>
      %13 = arith.truncf %12 : vector<128x128xf32> to vector<128x128xbf16>
      %c0_12 = arith.constant 0 : index
      %c0_13 = arith.constant 0 : index
      %14 = vector.load %arg4[%c0_12, %c0_13] : memref<128x128xbf16, #tpu.memory_space<vmem>>, vector<128x128xbf16>
      %cst_14 = arith.constant dense<0.000000e+00> : vector<128x128xf32>
      %15 = tpu.matmul %13, %14, %cst_14 {dimension_numbers = #tpu.dot_dimension_numbers<[1], [0], [0], [1], [0, 0, 1, 1], [], []>} : vector<128x128xbf16>, vector<128x128xbf16>, vector<128x128xf32> -> vector<128x128xf32>
      %c0_15 = arith.constant 0 : index
      %c0_16 = arith.constant 0 : index
      %16 = vector.load %arg5[%c0_15, %c0_16] : memref<1x128xf32, #tpu.memory_space<vmem>>, vector<1x128xf32>
      %17 = vector.broadcast %16 : vector<1x128xf32> to vector<128x128xf32>
      %18 = arith.addf %15, %17 : vector<128x128xf32>
      %19 = arith.truncf %18 : vector<128x128xf32> to vector<128x128xbf16>
      %c0_17 = arith.constant 0 : index
      %c0_18 = arith.constant 0 : index
      %20 = vector.load %arg6[%c0_17, %c0_18] : memref<128x128xbf16, #tpu.memory_space<vmem>>, vector<128x128xbf16>
      tpu.vector_store %arg6[%c0_17, %c0_18], %19 {strides = array<i32>} : memref<128x128xbf16, #tpu.memory_space<vmem>>, vector<128x128xbf16>,
    } else {
    }
    return
  }
  func.func @transform_0(%arg0: i32, %arg1: i32) -> (i32, i32) {
    %c0_i32 = arith.constant 0 : i32
    return %arg0, %arg1 : i32, i32
  }
  func.func @transform_1(%arg0: i32, %arg1: i32) -> (i32, i32) {
    %c0_i32 = arith.constant 0 : i32
    %c0_i32_0 = arith.constant 0 : i32
    return %arg1, %c0_i32 : i32, i32
  }
  func.func @transform_2(%arg0: i32, %arg1: i32) -> (i32, i32) {
    %c0_i32 = arith.constant 0 : i32
    %c0_i32_0 = arith.constant 0 : i32
    %c0_i32_1 = arith.constant 0 : i32
    return %c0_i32, %c0_i32_0 : i32, i32
  }
  func.func @transform_3(%arg0: i32, %arg1: i32) -> (i32, i32) {
    %c0_i32 = arith.constant 0 : i32
    %c0_i32_0 = arith.constant 0 : i32
    %c0_i32_1 = arith.constant 0 : i32
    return %c0_i32, %c0_i32_0 : i32, i32
  }
  func.func @transform_4(%arg0: i32, %arg1: i32) -> (i32, i32) {
    %c0_i32 = arith.constant 0 : i32
    %c0_i32_0 = arith.constant 0 : i32
    return %arg0, %c0_i32 : i32, i32
  }
}

module attributes {stable_mosaic.version = 11 : i64} {
  func.func @_pool_kernel(%arg0: i32, %arg1: memref<8x128xf32, #tpu.memory_space<vmem>>, %arg2: memref<128x128xbf16, #tpu.memory_space<vmem>>, %arg3: memref<8x128xf32, #tpu.memory_space<vmem>>) attributes {dimension_semantics = [#tpu.dimension_semantics<arbitrary>], iteration_bounds = array<i64: 1>, scalar_prefetch = 0 : i64, scratch_operands = 0 : i64, tpu.core_type = #tpu.core_type<tc>, window_params = [{transform_indices = @transform_0, window_bounds = array<i64: 8, 128>}, {transform_indices = @transform_1, window_bounds = array<i64: 128, 128>}, {pipeline_mode = #tpu.pipeline_mode<synchronous>, transform_indices = @transform_2, window_bounds = array<i64: 8, 128>}]} {
    %c0_i32 = arith.constant 0 : i32
    %0 = arith.cmpi eq, %arg0, %c0_i32 : i32
    %1 = arith.extui %0 : i1 to i32
    %c0_i32_0 = arith.constant 0 : i32
    %2 = arith.cmpi ne, %1, %c0_i32_0 : i32
    scf.if %2 {
      %cst_8 = arith.constant 0.000000e+00 : f32
      %10 = vector.broadcast %cst_8 : f32 to vector<8x128xf32>
      %c0_9 = arith.constant 0 : index
      %c0_10 = arith.constant 0 : index
      %11 = vector.load %arg3[%c0_9, %c0_10] : memref<8x128xf32, #tpu.memory_space<vmem>>, vector<8x128xf32>
      tpu.vector_store %arg3[%c0_9, %c0_10], %10 {strides = array<i32>} : memref<8x128xf32, #tpu.memory_space<vmem>>, vector<8x128xf32>,
    } else {
    }
    %c0 = arith.constant 0 : index
    %c0_1 = arith.constant 0 : index
    %3 = vector.load %arg3[%c0, %c0_1] : memref<8x128xf32, #tpu.memory_space<vmem>>, vector<8x128xf32>
    %c0_2 = arith.constant 0 : index
    %c0_3 = arith.constant 0 : index
    %4 = vector.load %arg1[%c0_2, %c0_3] : memref<8x128xf32, #tpu.memory_space<vmem>>, vector<8x128xf32>
    %c0_4 = arith.constant 0 : index
    %c0_5 = arith.constant 0 : index
    %5 = vector.load %arg2[%c0_4, %c0_5] : memref<128x128xbf16, #tpu.memory_space<vmem>>, vector<128x128xbf16>
    %6 = arith.extf %5 : vector<128x128xbf16> to vector<128x128xf32>
    %cst = arith.constant dense<0.000000e+00> : vector<8x128xf32>
    %7 = tpu.matmul %4, %6, %cst {dimension_numbers = #tpu.dot_dimension_numbers<[1], [0], [0], [1], [0, 0, 1, 1], [], []>} : vector<8x128xf32>, vector<128x128xf32>, vector<8x128xf32> -> vector<8x128xf32>
    %8 = arith.addf %3, %7 : vector<8x128xf32>
    %c0_6 = arith.constant 0 : index
    %c0_7 = arith.constant 0 : index
    %9 = vector.load %arg3[%c0_6, %c0_7] : memref<8x128xf32, #tpu.memory_space<vmem>>, vector<8x128xf32>
    tpu.vector_store %arg3[%c0_6, %c0_7], %8 {strides = array<i32>} : memref<8x128xf32, #tpu.memory_space<vmem>>, vector<8x128xf32>,
    return
  }
  func.func @transform_0(%arg0: i32) -> (i32, i32) {
    %c0_i32 = arith.constant 0 : i32
    %c0_i32_0 = arith.constant 0 : i32
    return %c0_i32, %arg0 : i32, i32
  }
  func.func @transform_1(%arg0: i32) -> (i32, i32) {
    %c0_i32 = arith.constant 0 : i32
    %c0_i32_0 = arith.constant 0 : i32
    return %arg0, %c0_i32 : i32, i32
  }
  func.func @transform_2(%arg0: i32) -> (i32, i32) {
    %c0_i32 = arith.constant 0 : i32
    %c0_i32_0 = arith.constant 0 : i32
    %c0_i32_1 = arith.constant 0 : i32
    return %c0_i32, %c0_i32_0 : i32, i32
  }
}

</mosaic_0001>

<bundles_post_ra>
// kernel: graph_classifier_forward.5
= control target key start
LH: loop header
LB: loop body
LE: loop exit
PB: predicated region body
PF: predicated region fallthrough
CT: control target
= control target key end

     0   :  { %v244_v0 = vmov 0.0|0.0   ;;  %vm245_vm0 = vmmov 0   ;;  %v246_v2 = vmov 0.0   ;;  %s292_s1 = inlined_call_operand.vmem [shape: bf16[128,128], index: 1, kind: input, shape index: {}]   ;;  %s293_s0 = inlined_call_operand.vmem [shape: f32[8,128], index: 0, kind: input, shape index: {}]   ;;  %s294_s2 = inlined_call_operand.vmem [shape: f32[8,128], index: 2, kind: output, shape index: {}]  }
   0x1   :  { %217 = vmatprep.subr.bf16.mxu0 %v244_v0  ;;  %v127_v1 = vld [vmem:[%s292_s1] sm:$0xff]   ;;  %214 = vmatprep.mubr.msk.f32.mxu0 %vm245_vm0, %v246_v2  ;;  %v158_v3 = vld [vmem:[%s292_s1 + $0x8] sm:$0xff]   ;;  %v159_v4 = vld [vmem:[%s292_s1 + $0x10] sm:$0xff]  }
   0x2   :  { %219 = vmatpush3.bf16.msra.mxu0 %v127_v1  ;;  %v160_v5 = vld [vmem:[%s292_s1 + $0x18] sm:$0xff]   ;;  %v161_v6 = vld [vmem:[%s292_s1 + $0x20] sm:$0xff]   ;;  %v162_v7 = vld [vmem:[%s292_s1 + $0x28] sm:$0xff]  }
   0x3   :  { %220 = vmatprep.subr.bf16.mxu0 %v244_v0  ;;  %v163_v8 = vld [vmem:[%s292_s1 + $0x30] sm:$0xff]   ;;  %v164_v9 = vld [vmem:[%s292_s1 + $0x38] sm:$0xff]   ;;  %v17_v10 = vld [vmem:[%s293_s0] sm:$0xff] }
   0x6   :  { %222 = vmatpush3.bf16.msra.mxu0 %v158_v3 }
   0x7   :  { %223 = vmatprep.subr.bf16.mxu0 %v244_v0 }
   0xa   :  { %225 = vmatpush3.bf16.msra.mxu0 %v159_v4 }
   0xb   :  { %226 = vmatprep.subr.bf16.mxu0 %v244_v0 }
   0xe   :  { %228 = vmatpush3.bf16.msra.mxu0 %v160_v5 }
   0xf   :  { %229 = vmatprep.subr.bf16.mxu0 %v244_v0 }
  0x12   :  { %231 = vmatpush3.bf16.msra.mxu0 %v161_v6 }
  0x13   :  { %232 = vmatprep.subr.bf16.mxu0 %v244_v0 }
  0x16   :  { %234 = vmatpush3.bf16.msra.mxu0 %v162_v7 }
  0x17   :  { %235 = vmatprep.subr.bf16.mxu0 %v244_v0 }
  0x1a   :  { %237 = vmatpush3.bf16.msra.mxu0 %v163_v8 }
  0x1b   :  { %238 = vmatprep.subr.bf16.mxu0 %v244_v0 }
  0x1e   :  { %240 = vmatpush3.bf16.msra.mxu0 %v164_v9 }
  0x21   :  { %215 = vmatmul.mubr.f32.vlgmr.msra.gmra.mrb[0].mxu0 %v17_v10 }
  0xf4   :  { %v116_v11 = vpop.f32.mrb[0].mxu0 }
  0xf5   :  { %v216_v12 = vpop.f32.mrb[1].mxu0  ;;  %121 = vst [vmem:[%s294_s2] sm:$0xff] %v116_v11 }

// kernel: graph_classifier_forward.3
= control target key start
LH: loop header
LB: loop body
LE: loop exit
PB: predicated region body
PF: predicated region fallthrough
CT: control target
= control target key end

     0   :  { %s954_s1 = inlined_call_operand.vmem [shape: bf16[128,128], index: 1, kind: input, shape index: {}]   ;;  %s955_s0 = inlined_call_operand.vmem [shape: bf16[128,128], index: 0, kind: input, shape index: {}]   ;;  %s956_s2 = inlined_call_operand.vmem [shape: bf16[128,128], index: 2, kind: input, shape index: {}]   ;;  %s957_s3 = inlined_call_operand.vmem [shape: f32[1,128], index: 3, kind: input, shape index: {}]   ;;  %s958_s4 = inlined_call_operand.vmem [shape: bf16[128,128], index: 4, kind: output, shape index: {}]  }
   0x1   :  { %v806_v0 = vld [vmem:[%s954_s1] sm:$0xff]   ;;  %v807_v1 = vld [vmem:[%s954_s1 + $0x8] sm:$0xff]   ;;  %v808_v2 = vld [vmem:[%s954_s1 + $0x10] sm:$0xff]  }
   0x2   :  { %742 = vmatprep.subr.bf16.mxu0 %v806_v0  ;;  %v809_v3 = vld [vmem:[%s954_s1 + $0x18] sm:$0xff]   ;;  %v814_v4 = vld [vmem:[%s955_s0] sm:$0xff]   ;;  %v811_v6 = vld [vmem:[%s954_s1 + $0x28] sm:$0xff]  }
   0x3   :  { %743 = vmatpush3.bf16.msra.mxu0 %v806_v0  ;;  %758 = vmatprep.mubr.bf16.mxu0 %v814_v4  ;;  %v810_v5 = vld [vmem:[%s954_s1 + $0x20] sm:$0xff]   ;;  %v823_v8 = vld [vmem:[%s956_s2 + $0x8] sm:$0xff]   ;;  %v812_v9 = vld [vmem:[%s954_s1 + $0x30] sm:$0xff]  }
   0x4   :  { %744 = vmatprep.subr.bf16.mxu0 %v807_v1  ;;  %v822_v7 = vld [vmem:[%s956_s2] sm:$0xff]   ;;  %v824_v10 = vld [vmem:[%s956_s2 + $0x10] sm:$0xff]   ;;  %v813_v11 = vld [vmem:[%s954_s1 + $0x38] sm:$0xff]  }
   0x5   :  { %774 = vmatprep.subr.bf16.mxu1 %v822_v7  ;;  %v825_v12 = vld [vmem:[%s956_s2 + $0x18] sm:$0xff]   ;;  %v826_v13 = vld [vmem:[%s956_s2 + $0x20] sm:$0xff]   ;;  %v815_v14 = vld [vmem:[%s955_s0 + $0x8] sm:$0xff]  }
   0x6   :  { %775 = vmatpush3.bf16.msra.mxu1 %v822_v7  ;;  %v816_v15 = vld [vmem:[%s955_s0 + $0x10] sm:$0xff]   ;;  %v827_v16 = vld [vmem:[%s956_s2 + $0x28] sm:$0xff]   ;;  %v817_v18 = vld [vmem:[%s955_s0 + $0x18] sm:$0xff]  }
   0x7   :  { %745 = vmatpush3.bf16.msra.mxu0 %v807_v1  ;;  %776 = vmatprep.subr.bf16.mxu1 %v823_v8  ;;  %v828_v17 = vld [vmem:[%s956_s2 + $0x30] sm:$0xff]   ;;  %v818_v19 = vld [vmem:[%s955_s0 + $0x20] sm:$0xff]   ;;  %v819_v20 = vld [vmem:[%s955_s0 + $0x28] sm:$0xff]  }
   0x8   :  { %746 = vmatprep.subr.bf16.mxu0 %v808_v2  ;;  %v820_v21 = vld [vmem:[%s955_s0 + $0x30] sm:$0xff]   ;;  %v821_v22 = vld [vmem:[%s955_s0 + $0x38] sm:$0xff]   ;;  %v622_v48 = vld [vmem:[%s957_s3] ss:$0 sm:$0xff] }
   0x9   :  { %v829_v23 = vld [vmem:[%s956_s2 + $0x38] sm:$0xff]  }
   0xa   :  { %777 = vmatpush3.bf16.msra.mxu1 %v823_v8 }
   0xb   :  { %747 = vmatpush3.bf16.msra.mxu0 %v808_v2  ;;  %778 = vmatprep.subr.bf16.mxu1 %v824_v10 }
   0xc   :  { %748 = vmatprep.subr.bf16.mxu0 %v809_v3 }
   0xe   :  { %779 = vmatpush3.bf16.msra.mxu1 %v824_v10 }
   0xf   :  { %749 = vmatpush3.bf16.msra.mxu0 %v809_v3  ;;  %780 = vmatprep.subr.bf16.mxu1 %v825_v12 }
  0x10   :  { %750 = vmatprep.subr.bf16.mxu0 %v810_v5 }
  0x12   :  { %781 = vmatpush3.bf16.msra.mxu1 %v825_v12 }
  0x13   :  { %751 = vmatpush3.bf16.msra.mxu0 %v810_v5  ;;  %782 = vmatprep.subr.bf16.mxu1 %v826_v13 }
  0x14   :  { %752 = vmatprep.subr.bf16.mxu0 %v811_v6 }
  0x16   :  { %783 = vmatpush3.bf16.msra.mxu1 %v826_v13 }
  0x17   :  { %753 = vmatpush3.bf16.msra.mxu0 %v811_v6  ;;  %784 = vmatprep.subr.bf16.mxu1 %v827_v16 }
  0x18   :  { %754 = vmatprep.subr.bf16.mxu0 %v812_v9 }
  0x1a   :  { %785 = vmatpush3.bf16.msra.mxu1 %v827_v16 }
  0x1b   :  { %755 = vmatpush3.bf16.msra.mxu0 %v812_v9  ;;  %786 = vmatprep.subr.bf16.mxu1 %v828_v17 }
  0x1c   :  { %756 = vmatprep.subr.bf16.mxu0 %v813_v11 }
  0x1e   :  { %787 = vmatpush3.bf16.msra.mxu1 %v828_v17 }
  0x1f   :  { %757 = vmatpush3.bf16.msra.mxu0 %v813_v11  ;;  %788 = vmatprep.subr.bf16.mxu1 %v829_v23 }
  0x22   :  { %759 = vmatmul.mubr.bf16.vlgmr.msra.gmra.mrb[0].mxu0 %v815_v14  ;;  %789 = vmatpush3.bf16.msra.mxu1 %v829_v23 }
  0x23   :  { %762 = vmatprep.mubr.bf16.mxu0 %v816_v15 }
  0x2a   :  { %763 = vmatmul.mubr.bf16.gmra.mrb[4].mxu0 %v817_v18 }
  0x2b   :  { %766 = vmatprep.mubr.bf16.mxu0 %v818_v19 }
  0x32   :  { %767 = vmatmul.mubr.bf16.gmra.mrb[8].mxu0 %v819_v20 }
  0x33   :  { %770 = vmatprep.mubr.bf16.mxu0 %v820_v21 }
  0x3a   :  { %771 = vmatmul.mubr.bf16.gmra.mrb[12].mxu0 %v821_v22 }
  0xf5   :  { %v760_v24 = vpop.f32.mrb[0].mxu0 }
  0xf6   :  { %v216_v25 = vpop.f32.mrb[1].mxu0 }
  0xf7   :  { %v761_v26 = vpop.f32.mrb[2].mxu0 }
  0xf8   :  { %v331_v27 = vpack.c.bf16 %v761_v26, %v760_v24  ;;  %v219_v28 = vpop.f32.mrb[3].mxu0 }
  0xf9   :  { %v330_v29 = vpack.c.bf16 %v219_v28, %v216_v25 }
  0xfb   :  { %790 = vmatprep.mubr.bf16.mxu1 %v330_v29 }
  0xfc   :  { %791 = vmatmul.mubr.bf16.vlgmr.msra.gmra.mrb[0].mxu1 %v331_v27 }
  0xfd   :  { %v764_v30 = vpop.f32.mrb[4].mxu0 }
  0xfe   :  { %v232_v31 = vpop.f32.mrb[5].mxu0 }
  0xff   :  { %v765_v32 = vpop.f32.mrb[6].mxu0 }
 0x100   :  { %v333_v33 = vpack.c.bf16 %v765_v32, %v764_v30  ;;  %v235_v34 = vpop.f32.mrb[7].mxu0 }
 0x101   :  { %v332_v35 = vpack.c.bf16 %v235_v34, %v232_v31 }
 0x103   :  { %794 = vmatprep.mubr.bf16.mxu1 %v332_v35 }
 0x104   :  { %795 = vmatmul.mubr.bf16.gmra.mrb[4].mxu1 %v333_v33 }
 0x105   :  { %v768_v36 = vpop.f32.mrb[8].mxu0 }
 0x106   :  { %v248_v37 = vpop.f32.mrb[9].mxu0 }
 0x107   :  { %v769_v38 = vpop.f32.mrb[10].mxu0 }
 0x108   :  { %v335_v39 = vpack.c.bf16 %v769_v38, %v768_v36  ;;  %v251_v40 = vpop.f32.mrb[11].mxu0 }
 0x109   :  { %v334_v41 = vpack.c.bf16 %v251_v40, %v248_v37 }
 0x10b   :  { %798 = vmatprep.mubr.bf16.mxu1 %v334_v41 }
 0x10c   :  { %799 = vmatmul.mubr.bf16.gmra.mrb[8].mxu1 %v335_v39 }
 0x10d   :  { %v772_v42 = vpop.f32.mrb[12].mxu0 }
 0x10e   :  { %v264_v43 = vpop.f32.mrb[13].mxu0 }
 0x10f   :  { %v773_v44 = vpop.f32.mrb[14].mxu0 }
 0x110   :  { %v337_v45 = vpack.c.bf16 %v773_v44, %v772_v42  ;;  %v267_v46 = vpop.f32.mrb[15].mxu0 }
 0x111   :  { %v336_v47 = vpack.c.bf16 %v267_v46, %v264_v43 }
 0x113   :  { %802 = vmatprep.mubr.bf16.mxu1 %v336_v47 }
 0x114   :  { %803 = vmatmul.mubr.bf16.gmra.mrb[12].mxu1 %v337_v45 }
 0x1cf   :  { %v792_v49 = vpop.f32.mrb[0].mxu1 }
 0x1d0   :  { %v452_v50 = vadd.f32 %v792_v49, %v622_v48  ;;  %v443_v51 = vpop.f32.mrb[1].mxu1 }
 0x1d1   :  { %v444_v52 = vadd.f32 %v622_v48, %v443_v51  ;;  %v793_v53 = vpop.f32.mrb[2].mxu1 }
 0x1d2   :  { %v455_v54 = vadd.f32 %v793_v53, %v622_v48  ;;  %v446_v55 = vpop.f32.mrb[3].mxu1  ;;  %v508_v57 = vmax.f32 %v452_v50, 0.0 }
 0x1d3   :  { %v447_v56 = vadd.f32 %v622_v48, %v446_v55  ;;  %v506_v59 = vmax.f32 %v444_v52, 0.0 }
 0x1d4   :  { %v509_v58 = vmax.f32 %v455_v54, 0.0 }
 0x1d5   :  { %v507_v60 = vmax.f32 %v447_v56, 0.0 }
 0x1d6   :  { %v671_v61 = vpack.c.bf16 %v509_v58, %v508_v57 }
 0x1d7   :  { %v666_v62 = vpack.c.bf16 %v507_v60, %v506_v59  ;;  %v796_v63 = vpop.f32.mrb[4].mxu1 }
 0x1d8   :  { %703 = vst [vmem:[%s958_s4 + $0x8] sm:$0xff] %v671_v61   ;;  %v468_v0 = vadd.f32 %v796_v63, %v622_v48  ;;  %v459_v1 = vpop.f32.mrb[5].mxu1 }
 0x1d9   :  { %667 = vst [vmem:[%s958_s4] sm:$0xff] %v666_v62   ;;  %v460_v2 = vadd.f32 %v622_v48, %v459_v1  ;;  %v797_v3 = vpop.f32.mrb[6].mxu1 }
 0x1da   :  { %v471_v4 = vadd.f32 %v797_v3, %v622_v48  ;;  %v462_v5 = vpop.f32.mrb[7].mxu1  ;;  %v512_v7 = vmax.f32 %v468_v0, 0.0 }
 0x1db   :  { %v463_v6 = vadd.f32 %v622_v48, %v462_v5  ;;  %v510_v9 = vmax.f32 %v460_v2, 0.0 }
 0x1dc   :  { %v513_v8 = vmax.f32 %v471_v4, 0.0 }
 0x1dd   :  { %v511_v10 = vmax.f32 %v463_v6, 0.0 }
 0x1de   :  { %v681_v11 = vpack.c.bf16 %v513_v8, %v512_v7 }
 0x1df   :  { %v676_v12 = vpack.c.bf16 %v511_v10, %v510_v9  ;;  %v800_v13 = vpop.f32.mrb[8].mxu1 }
 0x1e0   :  { %705 = vst [vmem:[%s958_s4 + $0x18] sm:$0xff] %v681_v11   ;;  %v484_v14 = vadd.f32 %v800_v13, %v622_v48  ;;  %v475_v15 = vpop.f32.mrb[9].mxu1 }
 0x1e1   :  { %704 = vst [vmem:[%s958_s4 + $0x10] sm:$0xff] %v676_v12   ;;  %v476_v16 = vadd.f32 %v622_v48, %v475_v15  ;;  %v801_v17 = vpop.f32.mrb[10].mxu1 }
 0x1e2   :  { %v487_v18 = vadd.f32 %v801_v17, %v622_v48  ;;  %v478_v19 = vpop.f32.mrb[11].mxu1  ;;  %v516_v21 = vmax.f32 %v484_v14, 0.0 }
 0x1e3   :  { %v479_v20 = vadd.f32 %v622_v48, %v478_v19  ;;  %v514_v23 = vmax.f32 %v476_v16, 0.0 }
 0x1e4   :  { %v517_v22 = vmax.f32 %v487_v18, 0.0 }
 0x1e5   :  { %v515_v24 = vmax.f32 %v479_v20, 0.0 }
 0x1e6   :  { %v691_v25 = vpack.c.bf16 %v517_v22, %v516_v21 }
 0x1e7   :  { %v686_v26 = vpack.c.bf16 %v515_v24, %v514_v23  ;;  %v804_v27 = vpop.f32.mrb[12].mxu1 }
 0x1e8   :  { %707 = vst [vmem:[%s958_s4 + $0x28] sm:$0xff] %v691_v25   ;;  %v500_v28 = vadd.f32 %v804_v27, %v622_v48  ;;  %v491_v29 = vpop.f32.mrb[13].mxu1 }
 0x1e9   :  { %706 = vst [vmem:[%s958_s4 + $0x20] sm:$0xff] %v686_v26   ;;  %v492_v30 = vadd.f32 %v622_v48, %v491_v29  ;;  %v805_v31 = vpop.f32.mrb[14].mxu1 }
 0x1ea   :  { %v503_v32 = vadd.f32 %v805_v31, %v622_v48  ;;  %v494_v33 = vpop.f32.mrb[15].mxu1  ;;  %v520_v35 = vmax.f32 %v500_v28, 0.0 }
 0x1eb   :  { %v495_v34 = vadd.f32 %v622_v48, %v494_v33  ;;  %v518_v37 = vmax.f32 %v492_v30, 0.0 }
 0x1ec   :  { %v521_v36 = vmax.f32 %v503_v32, 0.0 }
 0x1ed   :  { %v519_v38 = vmax.f32 %v495_v34, 0.0 }
 0x1ee   :  { %v701_v39 = vpack.c.bf16 %v521_v36, %v520_v35 }
 0x1ef   :  { %v696_v40 = vpack.c.bf16 %v519_v38, %v518_v37 }
 0x1f0   :  { %709 = vst [vmem:[%s958_s4 + $0x38] sm:$0xff] %v701_v39  }
 0x1f1   :  { %708 = vst [vmem:[%s958_s4 + $0x30] sm:$0xff] %v696_v40  }

// kernel: graph_classifier_forward.4
= control target key start
LH: loop header
LB: loop body
LE: loop exit
PB: predicated region body
PF: predicated region fallthrough
CT: control target
= control target key end

     0   :  { %s938_s1 = inlined_call_operand.vmem [shape: bf16[128,128], index: 1, kind: input, shape index: {}]   ;;  %s939_s0 = inlined_call_operand.vmem [shape: bf16[128,128], index: 0, kind: input, shape index: {}]   ;;  %s940_s2 = inlined_call_operand.vmem [shape: bf16[128,128], index: 2, kind: input, shape index: {}]   ;;  %s941_s3 = inlined_call_operand.vmem [shape: f32[1,128], index: 3, kind: input, shape index: {}]   ;;  %s942_s4 = inlined_call_operand.vmem [shape: bf16[128,128], index: 4, kind: output, shape index: {}]  }
   0x1   :  { %v790_v0 = vld [vmem:[%s938_s1] sm:$0xff]   ;;  %v791_v1 = vld [vmem:[%s938_s1 + $0x8] sm:$0xff]   ;;  %v792_v2 = vld [vmem:[%s938_s1 + $0x10] sm:$0xff]  }
   0x2   :  { %726 = vmatprep.subr.bf16.mxu0 %v790_v0  ;;  %v793_v3 = vld [vmem:[%s938_s1 + $0x18] sm:$0xff]   ;;  %v798_v4 = vld [vmem:[%s939_s0] sm:$0xff]   ;;  %v795_v6 = vld [vmem:[%s938_s1 + $0x28] sm:$0xff]  }
   0x3   :  { %727 = vmatpush3.bf16.msra.mxu0 %v790_v0  ;;  %742 = vmatprep.mubr.bf16.mxu0 %v798_v4  ;;  %v794_v5 = vld [vmem:[%s938_s1 + $0x20] sm:$0xff]   ;;  %v807_v8 = vld [vmem:[%s940_s2 + $0x8] sm:$0xff]   ;;  %v796_v9 = vld [vmem:[%s938_s1 + $0x30] sm:$0xff]  }
   0x4   :  { %728 = vmatprep.subr.bf16.mxu0 %v791_v1  ;;  %v806_v7 = vld [vmem:[%s940_s2] sm:$0xff]   ;;  %v808_v10 = vld [vmem:[%s940_s2 + $0x10] sm:$0xff]   ;;  %v797_v11 = vld [vmem:[%s938_s1 + $0x38] sm:$0xff]  }
   0x5   :  { %758 = vmatprep.subr.bf16.mxu1 %v806_v7  ;;  %v809_v12 = vld [vmem:[%s940_s2 + $0x18] sm:$0xff]   ;;  %v810_v13 = vld [vmem:[%s940_s2 + $0x20] sm:$0xff]   ;;  %v799_v14 = vld [vmem:[%s939_s0 + $0x8] sm:$0xff]  }
   0x6   :  { %759 = vmatpush3.bf16.msra.mxu1 %v806_v7  ;;  %v800_v15 = vld [vmem:[%s939_s0 + $0x10] sm:$0xff]   ;;  %v811_v16 = vld [vmem:[%s940_s2 + $0x28] sm:$0xff]   ;;  %v801_v18 = vld [vmem:[%s939_s0 + $0x18] sm:$0xff]  }
   0x7   :  { %729 = vmatpush3.bf16.msra.mxu0 %v791_v1  ;;  %760 = vmatprep.subr.bf16.mxu1 %v807_v8  ;;  %v812_v17 = vld [vmem:[%s940_s2 + $0x30] sm:$0xff]   ;;  %v802_v19 = vld [vmem:[%s939_s0 + $0x20] sm:$0xff]   ;;  %v803_v20 = vld [vmem:[%s939_s0 + $0x28] sm:$0xff]  }
   0x8   :  { %730 = vmatprep.subr.bf16.mxu0 %v792_v2  ;;  %v804_v21 = vld [vmem:[%s939_s0 + $0x30] sm:$0xff]   ;;  %v805_v22 = vld [vmem:[%s939_s0 + $0x38] sm:$0xff]   ;;  %v606_v49 = vld [vmem:[%s941_s3] ss:$0 sm:$0xff] }
   0x9   :  { %v813_v23 = vld [vmem:[%s940_s2 + $0x38] sm:$0xff]  }
   0xa   :  { %761 = vmatpush3.bf16.msra.mxu1 %v807_v8 }
   0xb   :  { %731 = vmatpush3.bf16.msra.mxu0 %v792_v2  ;;  %762 = vmatprep.subr.bf16.mxu1 %v808_v10 }
   0xc   :  { %732 = vmatprep.subr.bf16.mxu0 %v793_v3 }
   0xe   :  { %763 = vmatpush3.bf16.msra.mxu1 %v808_v10 }
   0xf   :  { %733 = vmatpush3.bf16.msra.mxu0 %v793_v3  ;;  %764 = vmatprep.subr.bf16.mxu1 %v809_v12 }
  0x10   :  { %734 = vmatprep.subr.bf16.mxu0 %v794_v5 }
  0x12   :  { %765 = vmatpush3.bf16.msra.mxu1 %v809_v12 }
  0x13   :  { %735 = vmatpush3.bf16.msra.mxu0 %v794_v5  ;;  %766 = vmatprep.subr.bf16.mxu1 %v810_v13 }
  0x14   :  { %736 = vmatprep.subr.bf16.mxu0 %v795_v6 }
  0x16   :  { %767 = vmatpush3.bf16.msra.mxu1 %v810_v13 }
  0x17   :  { %737 = vmatpush3.bf16.msra.mxu0 %v795_v6  ;;  %768 = vmatprep.subr.bf16.mxu1 %v811_v16 }
  0x18   :  { %738 = vmatprep.subr.bf16.mxu0 %v796_v9 }
  0x1a   :  { %769 = vmatpush3.bf16.msra.mxu1 %v811_v16 }
  0x1b   :  { %739 = vmatpush3.bf16.msra.mxu0 %v796_v9  ;;  %770 = vmatprep.subr.bf16.mxu1 %v812_v17 }
  0x1c   :  { %740 = vmatprep.subr.bf16.mxu0 %v797_v11 }
  0x1e   :  { %771 = vmatpush3.bf16.msra.mxu1 %v812_v17 }
  0x1f   :  { %741 = vmatpush3.bf16.msra.mxu0 %v797_v11  ;;  %772 = vmatprep.subr.bf16.mxu1 %v813_v23 }
  0x22   :  { %743 = vmatmul.mubr.bf16.vlgmr.msra.gmra.mrb[0].mxu0 %v799_v14  ;;  %773 = vmatpush3.bf16.msra.mxu1 %v813_v23 }
  0x23   :  { %746 = vmatprep.mubr.bf16.mxu0 %v800_v15 }
  0x2a   :  { %747 = vmatmul.mubr.bf16.gmra.mrb[4].mxu0 %v801_v18 }
  0x2b   :  { %750 = vmatprep.mubr.bf16.mxu0 %v802_v19 }
  0x32   :  { %751 = vmatmul.mubr.bf16.gmra.mrb[8].mxu0 %v803_v20 }
  0x33   :  { %754 = vmatprep.mubr.bf16.mxu0 %v804_v21 }
  0x3a   :  { %755 = vmatmul.mubr.bf16.gmra.mrb[12].mxu0 %v805_v22 }
  0xf5   :  { %v744_v24 = vpop.f32.mrb[0].mxu0 }
  0xf6   :  { %v216_v25 = vpop.f32.mrb[1].mxu0 }
  0xf7   :  { %v745_v26 = vpop.f32.mrb[2].mxu0 }
  0xf8   :  { %v331_v27 = vpack.c.bf16 %v745_v26, %v744_v24  ;;  %v219_v28 = vpop.f32.mrb[3].mxu0 }
  0xf9   :  { %v330_v29 = vpack.c.bf16 %v219_v28, %v216_v25 }
  0xfb   :  { %774 = vmatprep.mubr.bf16.mxu1 %v330_v29 }
  0xfc   :  { %775 = vmatmul.mubr.bf16.vlgmr.msra.gmra.mrb[0].mxu1 %v331_v27 }
  0xfd   :  { %v748_v30 = vpop.f32.mrb[4].mxu0 }
  0xfe   :  { %v232_v31 = vpop.f32.mrb[5].mxu0 }
  0xff   :  { %v749_v32 = vpop.f32.mrb[6].mxu0 }
 0x100   :  { %v333_v33 = vpack.c.bf16 %v749_v32, %v748_v30  ;;  %v235_v34 = vpop.f32.mrb[7].mxu0 }
 0x101   :  { %v332_v35 = vpack.c.bf16 %v235_v34, %v232_v31 }
 0x103   :  { %778 = vmatprep.mubr.bf16.mxu1 %v332_v35 }
 0x104   :  { %779 = vmatmul.mubr.bf16.gmra.mrb[4].mxu1 %v333_v33 }
 0x105   :  { %v752_v36 = vpop.f32.mrb[8].mxu0 }
 0x106   :  { %v248_v37 = vpop.f32.mrb[9].mxu0 }
 0x107   :  { %v753_v38 = vpop.f32.mrb[10].mxu0 }
 0x108   :  { %v335_v39 = vpack.c.bf16 %v753_v38, %v752_v36  ;;  %v251_v40 = vpop.f32.mrb[11].mxu0 }
 0x109   :  { %v334_v41 = vpack.c.bf16 %v251_v40, %v248_v37 }
 0x10b   :  { %782 = vmatprep.mubr.bf16.mxu1 %v334_v41 }
 0x10c   :  { %783 = vmatmul.mubr.bf16.gmra.mrb[8].mxu1 %v335_v39 }
 0x10d   :  { %v756_v42 = vpop.f32.mrb[12].mxu0 }
 0x10e   :  { %v264_v43 = vpop.f32.mrb[13].mxu0 }
 0x10f   :  { %v757_v44 = vpop.f32.mrb[14].mxu0 }
 0x110   :  { %v337_v45 = vpack.c.bf16 %v757_v44, %v756_v42  ;;  %v267_v46 = vpop.f32.mrb[15].mxu0 }
 0x111   :  { %v336_v47 = vpack.c.bf16 %v267_v46, %v264_v43 }
 0x113   :  { %786 = vmatprep.mubr.bf16.mxu1 %v336_v47 }
 0x114   :  { %787 = vmatmul.mubr.bf16.gmra.mrb[12].mxu1 %v337_v45 }
 0x1cf   :  { %v776_v48 = vpop.f32.mrb[0].mxu1 }
 0x1d0   :  { %v443_v50 = vpop.f32.mrb[1].mxu1  ;;  %v452_v52 = vadd.f32 %v776_v48, %v606_v49 }
 0x1d1   :  { %v777_v51 = vpop.f32.mrb[2].mxu1  ;;  %v444_v55 = vadd.f32 %v606_v49, %v443_v50 }
 0x1d2   :  { %v455_v53 = vadd.f32 %v777_v51, %v606_v49  ;;  %v446_v54 = vpop.f32.mrb[3].mxu1 }
 0x1d3   :  { %v447_v56 = vadd.f32 %v606_v49, %v446_v54 }
 0x1d4   :  { %v655_v57 = vpack.c.bf16 %v455_v53, %v452_v52 }
 0x1d5   :  { %v650_v58 = vpack.c.bf16 %v447_v56, %v444_v55 }
 0x1d6   :  { %687 = vst [vmem:[%s942_s4 + $0x8] sm:$0xff] %v655_v57  }
 0x1d7   :  { %651 = vst [vmem:[%s942_s4] sm:$0xff] %v650_v58   ;;  %v780_v59 = vpop.f32.mrb[4].mxu1 }
 0x1d8   :  { %v459_v60 = vpop.f32.mrb[5].mxu1  ;;  %v468_v62 = vadd.f32 %v780_v59, %v606_v49 }
 0x1d9   :  { %v781_v61 = vpop.f32.mrb[6].mxu1  ;;  %v460_v1 = vadd.f32 %v606_v49, %v459_v60 }
 0x1da   :  { %v471_v63 = vadd.f32 %v781_v61, %v606_v49  ;;  %v462_v0 = vpop.f32.mrb[7].mxu1 }
 0x1db   :  { %v463_v2 = vadd.f32 %v606_v49, %v462_v0 }
 0x1dc   :  { %v665_v3 = vpack.c.bf16 %v471_v63, %v468_v62 }
 0x1dd   :  { %v660_v4 = vpack.c.bf16 %v463_v2, %v460_v1 }
 0x1de   :  { %689 = vst [vmem:[%s942_s4 + $0x18] sm:$0xff] %v665_v3  }
 0x1df   :  { %688 = vst [vmem:[%s942_s4 + $0x10] sm:$0xff] %v660_v4   ;;  %v784_v5 = vpop.f32.mrb[8].mxu1 }
 0x1e0   :  { %v475_v6 = vpop.f32.mrb[9].mxu1  ;;  %v484_v8 = vadd.f32 %v784_v5, %v606_v49 }
 0x1e1   :  { %v785_v7 = vpop.f32.mrb[10].mxu1  ;;  %v476_v11 = vadd.f32 %v606_v49, %v475_v6 }
 0x1e2   :  { %v487_v9 = vadd.f32 %v785_v7, %v606_v49  ;;  %v478_v10 = vpop.f32.mrb[11].mxu1 }
 0x1e3   :  { %v479_v12 = vadd.f32 %v606_v49, %v478_v10 }
 0x1e4   :  { %v675_v13 = vpack.c.bf16 %v487_v9, %v484_v8 }
 0x1e5   :  { %v670_v14 = vpack.c.bf16 %v479_v12, %v476_v11 }
 0x1e6   :  { %691 = vst [vmem:[%s942_s4 + $0x28] sm:$0xff] %v675_v13  }
 0x1e7   :  { %690 = vst [vmem:[%s942_s4 + $0x20] sm:$0xff] %v670_v14   ;;  %v788_v15 = vpop.f32.mrb[12].mxu1 }
 0x1e8   :  { %v491_v16 = vpop.f32.mrb[13].mxu1  ;;  %v500_v18 = vadd.f32 %v788_v15, %v606_v49 }
 0x1e9   :  { %v789_v17 = vpop.f32.mrb[14].mxu1  ;;  %v492_v21 = vadd.f32 %v606_v49, %v491_v16 }
 0x1ea   :  { %v503_v19 = vadd.f32 %v789_v17, %v606_v49  ;;  %v494_v20 = vpop.f32.mrb[15].mxu1 }
 0x1eb   :  { %v495_v22 = vadd.f32 %v606_v49, %v494_v20 }
 0x1ec   :  { %v685_v23 = vpack.c.bf16 %v503_v19, %v500_v18 }
 0x1ed   :  { %v680_v24 = vpack.c.bf16 %v495_v22, %v492_v21 }
 0x1ee   :  { %693 = vst [vmem:[%s942_s4 + $0x38] sm:$0xff] %v685_v23  }
 0x1ef   :  { %692 = vst [vmem:[%s942_s4 + $0x30] sm:$0xff] %v680_v24  }

</bundles_post_ra>
